<compile_context>
chip_gen: v7x
topology: tpu7x:2x2x1
jax: 0.10.0
libtpu: 0.0.40
codegen_flags: <defaults>
</compile_context>

<pallas_src>
import functools

import jax
import jax.numpy as jnp
import numpy as np
from jax.experimental import pallas as pl
from jax.experimental.pallas import tpu as pltpu


def bigru_kernel(ids_ref, params_ref, out_ref, *, hidden_size, vocab):
    H = hidden_size
    V = vocab
    T = ids_ref.shape[0]
    G = params_ref.shape[1]          # 3 * LANE  (one 128-lane tile per gate)
    LANE = G // 3

    # ---- prologue: one-hot "gather" of the pre-projected embeddings.
    # gx[t] = table[ids[t]] @ W_ih^T + b_ih (+ b_hr/b_hz folded), both directions.
    onehot = (ids_ref[...] ==
              jax.lax.broadcasted_iota(jnp.int32, (T, V), 1)).astype(jnp.float32)
    gx = jnp.dot(onehot, params_ref[0:V, :],
                 preferred_element_type=jnp.float32)              # (T, 3*LANE)

    # Recurrent weight (block structured, zero-padded) -> bf16 once, off-chain.
    w_hh = params_ref[V:V + LANE, :].astype(jnp.bfloat16)         # (LANE, 3*LANE)
    # b_hn (n-gate recurrent bias) is the only bias not folded into gx.
    b_hn = params_ref[V + LANE:V + LANE + 1, 2 * LANE:]           # (1, LANE)

    # Forward-direction lanes are [0, H) inside each gate tile, backward [H, 2H).
    lane_in_tile = jax.lax.broadcasted_iota(jnp.int32, (1, G), 1) % LANE
    fwd_lane = lane_in_tile < H

    def gate_x(t):
        # fwd gates read token t, bwd gates read token T-1-t (static slices).
        return jnp.where(fwd_lane, gx[t:t + 1, :], gx[T - 1 - t:T - t, :])

    # ---- step 0: h0 == 0, so the recurrent matmul vanishes entirely.
    gx_t = gate_x(0)
    rz = jax.nn.sigmoid(gx_t[:, 0:2 * LANE])
    r = rz[:, 0:LANE]
    z = rz[:, LANE:2 * LANE]
    n = jnp.tanh(gx_t[:, 2 * LANE:] + r * b_hn)
    h = (1.0 - z) * n                                             # [fwd|bwd|pad=0]

    # ---- steps 1..T-1: serial bidirectional recurrence, state kept in vregs.
    for t in range(1, T):
        gx_t = gate_x(t)
        gh = jnp.dot(h.astype(jnp.bfloat16), w_hh,
                     preferred_element_type=jnp.float32)          # (1, 3*LANE)
        rz = jax.nn.sigmoid(gx_t[:, 0:2 * LANE] + gh[:, 0:2 * LANE])
        r = rz[:, 0:LANE]
        z = rz[:, LANE:2 * LANE]
        n = jnp.tanh(gx_t[:, 2 * LANE:] + r * (gh[:, 2 * LANE:] + b_hn))
        h = (1.0 - z) * n + z * h

    out_ref[...] = h           # single lane-dense (1, 128) store: [h_fwd|h_bwd|0]


def pack_sentence_embedding_params(weight_matrix, wih_f, whh_f, bih_f, bhh_f,
                                   wih_b, whh_b, bih_b, bhh_b, lane=128):
    """Pack the embedding table and PyTorch-layout GRU weights into one
    (V + lane + 1, 3*lane) f32 slab.

    Rows : [ emb_proj (V) | W_hh^T block-diag (lane) | b_hn (1) ]
    Lanes: gate tiles [r | z | n], each `lane` wide, holding [fwd(H) | bwd(H) | 0].
    emb_proj[v] = table[v] @ W_ih^T + b_ih (+ b_hr/b_hz for the r/z tiles), so the
    kernel's one-hot matmul directly yields the fully-biased input projection.
    (nn.Embedding's padding_idx=0 only affects gradients; forward is a lookup.)
    """
    table = np.asarray(weight_matrix, np.float32)
    V, _ = table.shape
    H = np.asarray(whh_f).shape[1]
    assert 2 * H <= lane, "both directions of one gate must fit in a 128-lane tile"
    G = 3 * lane

    emb_proj = np.zeros((V, G), np.float32)
    w_hh = np.zeros((lane, G), np.float32)
    b_hn = np.zeros((1, G), np.float32)

    dirs = [(wih_f, whh_f, bih_f, bhh_f), (wih_b, whh_b, bih_b, bhh_b)]
    for d, (wih, whh, bih, bhh) in enumerate(dirs):
        wih = np.asarray(wih, np.float32); whh = np.asarray(whh, np.float32)
        bih = np.asarray(bih, np.float32); bhh = np.asarray(bhh, np.float32)
        for g in range(3):                       # r, z, n (PyTorch gate order)
            c0 = g * lane + d * H
            proj = table @ wih[g * H:(g + 1) * H, :].T + bih[g * H:(g + 1) * H]
            if g < 2:                            # fold b_hr / b_hz into gx as well
                proj = proj + bhh[g * H:(g + 1) * H]
            else:                                # b_hn must stay inside r*(...)
                b_hn[0, c0:c0 + H] = bhh[g * H:(g + 1) * H]
            emb_proj[:, c0:c0 + H] = proj
            w_hh[d * H:(d + 1) * H, c0:c0 + H] = whh[g * H:(g + 1) * H, :].T

    return jnp.asarray(np.concatenate([emb_proj, w_hh, b_hn], axis=0))


@functools.partial(jax.jit, static_argnames=("hidden_size",))
def sentence_embedding_forward(token_ids, packed_params, *, hidden_size):
    T = token_ids.shape[0]
    lane = packed_params.shape[1] // 3
    vocab = packed_params.shape[0] - lane - 1
    out = pl.pallas_call(
        functools.partial(bigru_kernel, hidden_size=hidden_size, vocab=vocab),
        out_shape=jax.ShapeDtypeStruct((1, lane), jnp.float32),
        in_specs=[
            pl.BlockSpec(memory_space=pltpu.MemorySpace.VMEM),   # (T, 1) token ids
            pl.BlockSpec(memory_space=pltpu.MemorySpace.VMEM),   # fused param slab
        ],
        out_specs=pl.BlockSpec(memory_space=pltpu.MemorySpace.VMEM),
    )(token_ids.reshape(T, 1).astype(jnp.int32), packed_params)

    # lanes [0:H] = forward final hidden, [H:2H] = backward final hidden
    # == torch.cat((h_N[0], h_N[1]))   (slice fuses inside this jit)
    return out[0, :2 * hidden_size]


def _gru_ref_one_direction(x_emb, w_ih, w_hh, b_ih, b_hh, reverse):
    """Float64 numpy reference of one PyTorch GRU direction (PyTorch layouts)."""
    w_ih = np.asarray(w_ih, np.float64); w_hh = np.asarray(w_hh, np.float64)
    b_ih = np.asarray(b_ih, np.float64); b_hh = np.asarray(b_hh, np.float64)
    T = x_emb.shape[0]
    H = w_hh.shape[1]

    def sig(v):
        return 1.0 / (1.0 + np.exp(-v))

    h = np.zeros((H,), np.float64)
    order = range(T - 1, -1, -1) if reverse else range(T)
    for t in order:
        gx = w_ih @ x_emb[t] + b_ih
        gh = w_hh @ h + b_hh
        r = sig(gx[:H] + gh[:H])
        z = sig(gx[H:2 * H] + gh[H:2 * H])
        n = np.tanh(gx[2 * H:] + r * gh[2 * H:])
        h = (1.0 - z) * n + z * h
    return h


if __name__ == "__main__":
    vocab, D, H, T = 16, 32, 32, 8   # embedding_dim = input_size = 32, hidden = 32, seq = 8

    key = jax.random.PRNGKey(0)
    keys = jax.random.split(key, 10)

    weight_matrix = jax.random.normal(keys[0], (vocab, D), jnp.float32)
    bound = float(1.0 / (H ** 0.5))

    def u(k, shape):
        return jax.random.uniform(k, shape, jnp.float32, -bound, bound)

    # GRU parameters in PyTorch layout: (3H, D), (3H, H), (3H,), gate order [r,z,n].
    wih_f = u(keys[1], (3 * H, D)); whh_f = u(keys[2], (3 * H, H))
    bih_f = u(keys[3], (3 * H,));   bhh_f = u(keys[4], (3 * H,))
    wih_b = u(keys[5], (3 * H, D)); whh_b = u(keys[6], (3 * H, H))
    bih_b = u(keys[7], (3 * H,));   bhh_b = u(keys[8], (3 * H,))

    token_ids = jax.random.randint(keys[9], (T,), 0, vocab)

    packed = pack_sentence_embedding_params(
        weight_matrix, wih_f, whh_f, bih_f, bhh_f, wih_b, whh_b, bih_b, bhh_b)

    out = sentence_embedding_forward(token_ids, packed, hidden_size=H)
    out = jax.block_until_ready(out)
    assert out.shape == (2 * H,)

    # Cross-check against a float64 numpy reference of the PyTorch forward.
    tbl = np.asarray(weight_matrix, np.float64)
    x_emb = tbl[np.asarray(token_ids)]
    hf = _gru_ref_one_direction(x_emb, wih_f, whh_f, bih_f, bhh_f, reverse=False)
    hb = _gru_ref_one_direction(x_emb, wih_b, whh_b, bih_b, bhh_b, reverse=True)
    ref = np.concatenate([hf, hb])
    err = float(np.max(np.abs(np.asarray(out, np.float64) - ref)))
    # bf16 operands on the recurrent MXU matmul -> relaxed tolerance vs f32 version
    assert err < 2e-2, (err, out, ref)

    print("KERNEL_OK")
</pallas_src>

<mosaic_0001>
module attributes {stable_mosaic.version = 11 : i64} {
  func.func @bigru_kernel(%arg0: memref<8x1xi32, #tpu.memory_space<vmem>>, %arg1: memref<145x384xf32, #tpu.memory_space<vmem>>, %arg2: memref<1x128xf32, #tpu.memory_space<vmem>>) attributes {dimension_semantics = [], scalar_prefetch = 0 : i64, scratch_operands = 0 : i64, tpu.core_type = #tpu.core_type<tc>} {
    %c0 = arith.constant 0 : index
    %c0_0 = arith.constant 0 : index
    %0 = vector.load %arg0[%c0, %c0_0] : memref<8x1xi32, #tpu.memory_space<vmem>>, vector<8x1xi32>
    %1 = tpu.iota {dimensions = array<i32: 1>} : vector<8x16xi32>
    %2 = vector.broadcast %0 : vector<8x1xi32> to vector<8x16xi32>
    %3 = arith.cmpi eq, %2, %1 : vector<8x16xi32>
    %4 = arith.extui %3 : vector<8x16xi1> to vector<8x16xi32>
    %5 = arith.sitofp %4 : vector<8x16xi32> to vector<8x16xf32>
    %c0_1 = arith.constant 0 : index
    %c0_2 = arith.constant 0 : index
    %6 = vector.load %arg1[%c0_1, %c0_2] : memref<145x384xf32, #tpu.memory_space<vmem>>, vector<16x384xf32>
    %cst = arith.constant dense<0.000000e+00> : vector<8x384xf32>
    %7 = tpu.matmul %5, %6, %cst {dimension_numbers = #tpu.dot_dimension_numbers<[1], [0], [0], [1], [0, 0, 1, 1], [], []>} : vector<8x16xf32>, vector<16x384xf32>, vector<8x384xf32> -> vector<8x384xf32>
    %c16 = arith.constant 16 : index
    %c0_3 = arith.constant 0 : index
    %8 = vector.load %arg1[%c16, %c0_3] : memref<145x384xf32, #tpu.memory_space<vmem>>, vector<128x384xf32>
    %9 = arith.truncf %8 : vector<128x384xf32> to vector<128x384xbf16>
    %c144 = arith.constant 144 : index
    %c256 = arith.constant 256 : index
    %10 = vector.load %arg1[%c144, %c256] : memref<145x384xf32, #tpu.memory_space<vmem>>, vector<1x128xf32>
    %11 = tpu.iota {dimensions = array<i32: 1>} : vector<1x384xi32>
    %c128_i32 = arith.constant 128 : i32
    %c0_i32 = arith.constant 0 : i32
    %12 = arith.cmpi eq, %c128_i32, %c0_i32 : i32
    %c1_i32 = arith.constant 1 : i32
    %13 = arith.select %12, %c1_i32, %c128_i32 : i32
    %14 = vector.broadcast %13 : i32 to vector<1x384xi32>
    %15 = arith.remsi %11, %14 : vector<1x384xi32>
    %c0_i32_4 = arith.constant 0 : i32
    %16 = vector.broadcast %c0_i32_4 : i32 to vector<1x384xi32>
    %17 = arith.cmpi ne, %15, %16 : vector<1x384xi32>
    %c0_i32_5 = arith.constant 0 : i32
    %18 = vector.broadcast %c0_i32_5 : i32 to vector<1x384xi32>
    %19 = arith.cmpi slt, %15, %18 : vector<1x384xi32>
    %c0_i32_6 = arith.constant 0 : i32
    %20 = arith.cmpi slt, %13, %c0_i32_6 : i32
    %21 = vector.broadcast %20 : i1 to vector<1x384xi1>
    %22 = vector.broadcast %21 : vector<1x384xi1> to vector<1x384xi1>
    %23 = arith.xori %19, %22 : vector<1x384xi1>
    %24 = arith.andi %23, %17 : vector<1x384xi1>
    %25 = vector.broadcast %13 : i32 to vector<1x384xi32>
    %26 = arith.addi %15, %25 : vector<1x384xi32>
    %27 = arith.select %24, %26, %15 : vector<1x384xi1>, vector<1x384xi32>
    %c32_i32 = arith.constant 32 : i32
    %28 = vector.broadcast %c32_i32 : i32 to vector<1x384xi32>
    %29 = arith.cmpi slt, %27, %28 : vector<1x384xi32>
    %30 = vector.extract_strided_slice %7 {offsets = [0, 0], sizes = [1, 384], strides = [1, 1]} : vector<8x384xf32> to vector<1x384xf32>
    %31 = vector.extract_strided_slice %7 {offsets = [7, 0], sizes = [1, 384], strides = [1, 1]} : vector<8x384xf32> to vector<1x384xf32>
    %32 = arith.select %29, %30, %31 : vector<1x384xi1>, vector<1x384xf32>
    %33 = vector.extract_strided_slice %32 {offsets = [0, 0], sizes = [1, 256], strides = [1, 1]} : vector<1x384xf32> to vector<1x256xf32>
    %34 = arith.negf %33 : vector<1x256xf32>
    %35 = math.exp %34 : vector<1x256xf32>
    %cst_7 = arith.constant 1.000000e+00 : f32
    %36 = vector.broadcast %cst_7 : f32 to vector<1x256xf32>
    %37 = arith.addf %36, %35 : vector<1x256xf32>
    %38 = arith.divf %36, %37 : vector<1x256xf32>
    %39 = vector.extract_strided_slice %38 {offsets = [0, 0], sizes = [1, 128], strides = [1, 1]} : vector<1x256xf32> to vector<1x128xf32>
    %40 = vector.extract_strided_slice %38 {offsets = [0, 128], sizes = [1, 128], strides = [1, 1]} : vector<1x256xf32> to vector<1x128xf32>
    %41 = vector.extract_strided_slice %32 {offsets = [0, 256], sizes = [1, 128], strides = [1, 1]} : vector<1x384xf32> to vector<1x128xf32>
    %42 = arith.mulf %39, %10 : vector<1x128xf32>
    %43 = arith.addf %41, %42 : vector<1x128xf32>
    %44 = math.tanh %43 : vector<1x128xf32>
    %cst_8 = arith.constant 1.000000e+00 : f32
    %45 = vector.broadcast %cst_8 : f32 to vector<1x128xf32>
    %46 = arith.subf %45, %40 : vector<1x128xf32>
    %47 = arith.mulf %46, %44 : vector<1x128xf32>
    %48 = vector.extract_strided_slice %7 {offsets = [1, 0], sizes = [1, 384], strides = [1, 1]} : vector<8x384xf32> to vector<1x384xf32>
    %49 = vector.extract_strided_slice %7 {offsets = [6, 0], sizes = [1, 384], strides = [1, 1]} : vector<8x384xf32> to vector<1x384xf32>
    %50 = arith.select %29, %48, %49 : vector<1x384xi1>, vector<1x384xf32>
    %51 = arith.truncf %47 : vector<1x128xf32> to vector<1x128xbf16>
    %cst_9 = arith.constant dense<0.000000e+00> : vector<1x384xf32>
    %52 = tpu.matmul %51, %9, %cst_9 {dimension_numbers = #tpu.dot_dimension_numbers<[1], [0], [0], [1], [0, 0, 1, 1], [], []>} : vector<1x128xbf16>, vector<128x384xbf16>, vector<1x384xf32> -> vector<1x384xf32>
    %53 = vector.extract_strided_slice %50 {offsets = [0, 0], sizes = [1, 256], strides = [1, 1]} : vector<1x384xf32> to vector<1x256xf32>
    %54 = vector.extract_strided_slice %52 {offsets = [0, 0], sizes = [1, 256], strides = [1, 1]} : vector<1x384xf32> to vector<1x256xf32>
    %55 = arith.addf %53, %54 : vector<1x256xf32>
    %56 = arith.negf %55 : vector<1x256xf32>
    %57 = math.exp %56 : vector<1x256xf32>
    %cst_10 = arith.constant 1.000000e+00 : f32
    %58 = vector.broadcast %cst_10 : f32 to vector<1x256xf32>
    %59 = arith.addf %58, %57 : vector<1x256xf32>
    %60 = arith.divf %58, %59 : vector<1x256xf32>
    %61 = vector.extract_strided_slice %60 {offsets = [0, 0], sizes = [1, 128], strides = [1, 1]} : vector<1x256xf32> to vector<1x128xf32>
    %62 = vector.extract_strided_slice %60 {offsets = [0, 128], sizes = [1, 128], strides = [1, 1]} : vector<1x256xf32> to vector<1x128xf32>
    %63 = vector.extract_strided_slice %50 {offsets = [0, 256], sizes = [1, 128], strides = [1, 1]} : vector<1x384xf32> to vector<1x128xf32>
    %64 = vector.extract_strided_slice %52 {offsets = [0, 256], sizes = [1, 128], strides = [1, 1]} : vector<1x384xf32> to vector<1x128xf32>
    %65 = arith.addf %64, %10 : vector<1x128xf32>
    %66 = arith.mulf %61, %65 : vector<1x128xf32>
    %67 = arith.addf %63, %66 : vector<1x128xf32>
    %68 = math.tanh %67 : vector<1x128xf32>
    %cst_11 = arith.constant 1.000000e+00 : f32
    %69 = vector.broadcast %cst_11 : f32 to vector<1x128xf32>
    %70 = arith.subf %69, %62 : vector<1x128xf32>
    %71 = arith.mulf %70, %68 : vector<1x128xf32>
    %72 = arith.mulf %62, %47 : vector<1x128xf32>
    %73 = arith.addf %71, %72 : vector<1x128xf32>
    %74 = vector.extract_strided_slice %7 {offsets = [2, 0], sizes = [1, 384], strides = [1, 1]} : vector<8x384xf32> to vector<1x384xf32>
    %75 = vector.extract_strided_slice %7 {offsets = [5, 0], sizes = [1, 384], strides = [1, 1]} : vector<8x384xf32> to vector<1x384xf32>
    %76 = arith.select %29, %74, %75 : vector<1x384xi1>, vector<1x384xf32>
    %77 = arith.truncf %73 : vector<1x128xf32> to vector<1x128xbf16>
    %cst_12 = arith.constant dense<0.000000e+00> : vector<1x384xf32>
    %78 = tpu.matmul %77, %9, %cst_12 {dimension_numbers = #tpu.dot_dimension_numbers<[1], [0], [0], [1], [0, 0, 1, 1], [], []>} : vector<1x128xbf16>, vector<128x384xbf16>, vector<1x384xf32> -> vector<1x384xf32>
    %79 = vector.extract_strided_slice %76 {offsets = [0, 0], sizes = [1, 256], strides = [1, 1]} : vector<1x384xf32> to vector<1x256xf32>
    %80 = vector.extract_strided_slice %78 {offsets = [0, 0], sizes = [1, 256], strides = [1, 1]} : vector<1x384xf32> to vector<1x256xf32>
    %81 = arith.addf %79, %80 : vector<1x256xf32>
    %82 = arith.negf %81 : vector<1x256xf32>
    %83 = math.exp %82 : vector<1x256xf32>
    %cst_13 = arith.constant 1.000000e+00 : f32
    %84 = vector.broadcast %cst_13 : f32 to vector<1x256xf32>
    %85 = arith.addf %84, %83 : vector<1x256xf32>
    %86 = arith.divf %84, %85 : vector<1x256xf32>
    %87 = vector.extract_strided_slice %86 {offsets = [0, 0], sizes = [1, 128], strides = [1, 1]} : vector<1x256xf32> to vector<1x128xf32>
    %88 = vector.extract_strided_slice %86 {offsets = [0, 128], sizes = [1, 128], strides = [1, 1]} : vector<1x256xf32> to vector<1x128xf32>
    %89 = vector.extract_strided_slice %76 {offsets = [0, 256], sizes = [1, 128], strides = [1, 1]} : vector<1x384xf32> to vector<1x128xf32>
    %90 = vector.extract_strided_slice %78 {offsets = [0, 256], sizes = [1, 128], strides = [1, 1]} : vector<1x384xf32> to vector<1x128xf32>
    %91 = arith.addf %90, %10 : vector<1x128xf32>
    %92 = arith.mulf %87, %91 : vector<1x128xf32>
    %93 = arith.addf %89, %92 : vector<1x128xf32>
    %94 = math.tanh %93 : vector<1x128xf32>
    %cst_14 = arith.constant 1.000000e+00 : f32
    %95 = vector.broadcast %cst_14 : f32 to vector<1x128xf32>
    %96 = arith.subf %95, %88 : vector<1x128xf32>
    %97 = arith.mulf %96, %94 : vector<1x128xf32>
    %98 = arith.mulf %88, %73 : vector<1x128xf32>
    %99 = arith.addf %97, %98 : vector<1x128xf32>
    %100 = vector.extract_strided_slice %7 {offsets = [3, 0], sizes = [1, 384], strides = [1, 1]} : vector<8x384xf32> to vector<1x384xf32>
    %101 = vector.extract_strided_slice %7 {offsets = [4, 0], sizes = [1, 384], strides = [1, 1]} : vector<8x384xf32> to vector<1x384xf32>
    %102 = arith.select %29, %100, %101 : vector<1x384xi1>, vector<1x384xf32>
    %103 = arith.truncf %99 : vector<1x128xf32> to vector<1x128xbf16>
    %cst_15 = arith.constant dense<0.000000e+00> : vector<1x384xf32>
    %104 = tpu.matmul %103, %9, %cst_15 {dimension_numbers = #tpu.dot_dimension_numbers<[1], [0], [0], [1], [0, 0, 1, 1], [], []>} : vector<1x128xbf16>, vector<128x384xbf16>, vector<1x384xf32> -> vector<1x384xf32>
    %105 = vector.extract_strided_slice %102 {offsets = [0, 0], sizes = [1, 256], strides = [1, 1]} : vector<1x384xf32> to vector<1x256xf32>
    %106 = vector.extract_strided_slice %104 {offsets = [0, 0], sizes = [1, 256], strides = [1, 1]} : vector<1x384xf32> to vector<1x256xf32>
    %107 = arith.addf %105, %106 : vector<1x256xf32>
    %108 = arith.negf %107 : vector<1x256xf32>
    %109 = math.exp %108 : vector<1x256xf32>
    %cst_16 = arith.constant 1.000000e+00 : f32
    %110 = vector.broadcast %cst_16 : f32 to vector<1x256xf32>
    %111 = arith.addf %110, %109 : vector<1x256xf32>
    %112 = arith.divf %110, %111 : vector<1x256xf32>
    %113 = vector.extract_strided_slice %112 {offsets = [0, 0], sizes = [1, 128], strides = [1, 1]} : vector<1x256xf32> to vector<1x128xf32>
    %114 = vector.extract_strided_slice %112 {offsets = [0, 128], sizes = [1, 128], strides = [1, 1]} : vector<1x256xf32> to vector<1x128xf32>
    %115 = vector.extract_strided_slice %102 {offsets = [0, 256], sizes = [1, 128], strides = [1, 1]} : vector<1x384xf32> to vector<1x128xf32>
    %116 = vector.extract_strided_slice %104 {offsets = [0, 256], sizes = [1, 128], strides = [1, 1]} : vector<1x384xf32> to vector<1x128xf32>
    %117 = arith.addf %116, %10 : vector<1x128xf32>
    %118 = arith.mulf %113, %117 : vector<1x128xf32>
    %119 = arith.addf %115, %118 : vector<1x128xf32>
    %120 = math.tanh %119 : vector<1x128xf32>
    %cst_17 = arith.constant 1.000000e+00 : f32
    %121 = vector.broadcast %cst_17 : f32 to vector<1x128xf32>
    %122 = arith.subf %121, %114 : vector<1x128xf32>
    %123 = arith.mulf %122, %120 : vector<1x128xf32>
    %124 = arith.mulf %114, %99 : vector<1x128xf32>
    %125 = arith.addf %123, %124 : vector<1x128xf32>
    %126 = vector.extract_strided_slice %7 {offsets = [4, 0], sizes = [1, 384], strides = [1, 1]} : vector<8x384xf32> to vector<1x384xf32>
    %127 = vector.extract_strided_slice %7 {offsets = [3, 0], sizes = [1, 384], strides = [1, 1]} : vector<8x384xf32> to vector<1x384xf32>
    %128 = arith.select %29, %126, %127 : vector<1x384xi1>, vector<1x384xf32>
    %129 = arith.truncf %125 : vector<1x128xf32> to vector<1x128xbf16>
    %cst_18 = arith.constant dense<0.000000e+00> : vector<1x384xf32>
    %130 = tpu.matmul %129, %9, %cst_18 {dimension_numbers = #tpu.dot_dimension_numbers<[1], [0], [0], [1], [0, 0, 1, 1], [], []>} : vector<1x128xbf16>, vector<128x384xbf16>, vector<1x384xf32> -> vector<1x384xf32>
    %131 = vector.extract_strided_slice %128 {offsets = [0, 0], sizes = [1, 256], strides = [1, 1]} : vector<1x384xf32> to vector<1x256xf32>
    %132 = vector.extract_strided_slice %130 {offsets = [0, 0], sizes = [1, 256], strides = [1, 1]} : vector<1x384xf32> to vector<1x256xf32>
    %133 = arith.addf %131, %132 : vector<1x256xf32>
    %134 = arith.negf %133 : vector<1x256xf32>
    %135 = math.exp %134 : vector<1x256xf32>
    %cst_19 = arith.constant 1.000000e+00 : f32
    %136 = vector.broadcast %cst_19 : f32 to vector<1x256xf32>
    %137 = arith.addf %136, %135 : vector<1x256xf32>
    %138 = arith.divf %136, %137 : vector<1x256xf32>
    %139 = vector.extract_strided_slice %138 {offsets = [0, 0], sizes = [1, 128], strides = [1, 1]} : vector<1x256xf32> to vector<1x128xf32>
    %140 = vector.extract_strided_slice %138 {offsets = [0, 128], sizes = [1, 128], strides = [1, 1]} : vector<1x256xf32> to vector<1x128xf32>
    %141 = vector.extract_strided_slice %128 {offsets = [0, 256], sizes = [1, 128], strides = [1, 1]} : vector<1x384xf32> to vector<1x128xf32>
    %142 = vector.extract_strided_slice %130 {offsets = [0, 256], sizes = [1, 128], strides = [1, 1]} : vector<1x384xf32> to vector<1x128xf32>
    %143 = arith.addf %142, %10 : vector<1x128xf32>
    %144 = arith.mulf %139, %143 : vector<1x128xf32>
    %145 = arith.addf %141, %144 : vector<1x128xf32>
    %146 = math.tanh %145 : vector<1x128xf32>
    %cst_20 = arith.constant 1.000000e+00 : f32
    %147 = vector.broadcast %cst_20 : f32 to vector<1x128xf32>
    %148 = arith.subf %147, %140 : vector<1x128xf32>
    %149 = arith.mulf %148, %146 : vector<1x128xf32>
    %150 = arith.mulf %140, %125 : vector<1x128xf32>
    %151 = arith.addf %149, %150 : vector<1x128xf32>
    %152 = vector.extract_strided_slice %7 {offsets = [5, 0], sizes = [1, 384], strides = [1, 1]} : vector<8x384xf32> to vector<1x384xf32>
    %153 = vector.extract_strided_slice %7 {offsets = [2, 0], sizes = [1, 384], strides = [1, 1]} : vector<8x384xf32> to vector<1x384xf32>
    %154 = arith.select %29, %152, %153 : vector<1x384xi1>, vector<1x384xf32>
    %155 = arith.truncf %151 : vector<1x128xf32> to vector<1x128xbf16>
    %cst_21 = arith.constant dense<0.000000e+00> : vector<1x384xf32>
    %156 = tpu.matmul %155, %9, %cst_21 {dimension_numbers = #tpu.dot_dimension_numbers<[1], [0], [0], [1], [0, 0, 1, 1], [], []>} : vector<1x128xbf16>, vector<128x384xbf16>, vector<1x384xf32> -> vector<1x384xf32>
    %157 = vector.extract_strided_slice %154 {offsets = [0, 0], sizes = [1, 256], strides = [1, 1]} : vector<1x384xf32> to vector<1x256xf32>
    %158 = vector.extract_strided_slice %156 {offsets = [0, 0], sizes = [1, 256], strides = [1, 1]} : vector<1x384xf32> to vector<1x256xf32>
    %159 = arith.addf %157, %158 : vector<1x256xf32>
    %160 = arith.negf %159 : vector<1x256xf32>
    %161 = math.exp %160 : vector<1x256xf32>
    %cst_22 = arith.constant 1.000000e+00 : f32
    %162 = vector.broadcast %cst_22 : f32 to vector<1x256xf32>
    %163 = arith.addf %162, %161 : vector<1x256xf32>
    %164 = arith.divf %162, %163 : vector<1x256xf32>
    %165 = vector.extract_strided_slice %164 {offsets = [0, 0], sizes = [1, 128], strides = [1, 1]} : vector<1x256xf32> to vector<1x128xf32>
    %166 = vector.extract_strided_slice %164 {offsets = [0, 128], sizes = [1, 128], strides = [1, 1]} : vector<1x256xf32> to vector<1x128xf32>
    %167 = vector.extract_strided_slice %154 {offsets = [0, 256], sizes = [1, 128], strides = [1, 1]} : vector<1x384xf32> to vector<1x128xf32>
    %168 = vector.extract_strided_slice %156 {offsets = [0, 256], sizes = [1, 128], strides = [1, 1]} : vector<1x384xf32> to vector<1x128xf32>
    %169 = arith.addf %168, %10 : vector<1x128xf32>
    %170 = arith.mulf %165, %169 : vector<1x128xf32>
    %171 = arith.addf %167, %170 : vector<1x128xf32>
    %172 = math.tanh %171 : vector<1x128xf32>
    %cst_23 = arith.constant 1.000000e+00 : f32
    %173 = vector.broadcast %cst_23 : f32 to vector<1x128xf32>
    %174 = arith.subf %173, %166 : vector<1x128xf32>
    %175 = arith.mulf %174, %172 : vector<1x128xf32>
    %176 = arith.mulf %166, %151 : vector<1x128xf32>
    %177 = arith.addf %175, %176 : vector<1x128xf32>
    %178 = vector.extract_strided_slice %7 {offsets = [6, 0], sizes = [1, 384], strides = [1, 1]} : vector<8x384xf32> to vector<1x384xf32>
    %179 = vector.extract_strided_slice %7 {offsets = [1, 0], sizes = [1, 384], strides = [1, 1]} : vector<8x384xf32> to vector<1x384xf32>
    %180 = arith.select %29, %178, %179 : vector<1x384xi1>, vector<1x384xf32>
    %181 = arith.truncf %177 : vector<1x128xf32> to vector<1x128xbf16>
    %cst_24 = arith.constant dense<0.000000e+00> : vector<1x384xf32>
    %182 = tpu.matmul %181, %9, %cst_24 {dimension_numbers = #tpu.dot_dimension_numbers<[1], [0], [0], [1], [0, 0, 1, 1], [], []>} : vector<1x128xbf16>, vector<128x384xbf16>, vector<1x384xf32> -> vector<1x384xf32>
    %183 = vector.extract_strided_slice %180 {offsets = [0, 0], sizes = [1, 256], strides = [1, 1]} : vector<1x384xf32> to vector<1x256xf32>
    %184 = vector.extract_strided_slice %182 {offsets = [0, 0], sizes = [1, 256], strides = [1, 1]} : vector<1x384xf32> to vector<1x256xf32>
    %185 = arith.addf %183, %184 : vector<1x256xf32>
    %186 = arith.negf %185 : vector<1x256xf32>
    %187 = math.exp %186 : vector<1x256xf32>
    %cst_25 = arith.constant 1.000000e+00 : f32
    %188 = vector.broadcast %cst_25 : f32 to vector<1x256xf32>
    %189 = arith.addf %188, %187 : vector<1x256xf32>
    %190 = arith.divf %188, %189 : vector<1x256xf32>
    %191 = vector.extract_strided_slice %190 {offsets = [0, 0], sizes = [1, 128], strides = [1, 1]} : vector<1x256xf32> to vector<1x128xf32>
    %192 = vector.extract_strided_slice %190 {offsets = [0, 128], sizes = [1, 128], strides = [1, 1]} : vector<1x256xf32> to vector<1x128xf32>
    %193 = vector.extract_strided_slice %180 {offsets = [0, 256], sizes = [1, 128], strides = [1, 1]} : vector<1x384xf32> to vector<1x128xf32>
    %194 = vector.extract_strided_slice %182 {offsets = [0, 256], sizes = [1, 128], strides = [1, 1]} : vector<1x384xf32> to vector<1x128xf32>
    %195 = arith.addf %194, %10 : vector<1x128xf32>
    %196 = arith.mulf %191, %195 : vector<1x128xf32>
    %197 = arith.addf %193, %196 : vector<1x128xf32>
    %198 = math.tanh %197 : vector<1x128xf32>
    %cst_26 = arith.constant 1.000000e+00 : f32
    %199 = vector.broadcast %cst_26 : f32 to vector<1x128xf32>
    %200 = arith.subf %199, %192 : vector<1x128xf32>
    %201 = arith.mulf %200, %198 : vector<1x128xf32>
    %202 = arith.mulf %192, %177 : vector<1x128xf32>
    %203 = arith.addf %201, %202 : vector<1x128xf32>
    %204 = vector.extract_strided_slice %7 {offsets = [7, 0], sizes = [1, 384], strides = [1, 1]} : vector<8x384xf32> to vector<1x384xf32>
    %205 = vector.extract_strided_slice %7 {offsets = [0, 0], sizes = [1, 384], strides = [1, 1]} : vector<8x384xf32> to vector<1x384xf32>
    %206 = arith.select %29, %204, %205 : vector<1x384xi1>, vector<1x384xf32>
    %207 = arith.truncf %203 : vector<1x128xf32> to vector<1x128xbf16>
    %cst_27 = arith.constant dense<0.000000e+00> : vector<1x384xf32>
    %208 = tpu.matmul %207, %9, %cst_27 {dimension_numbers = #tpu.dot_dimension_numbers<[1], [0], [0], [1], [0, 0, 1, 1], [], []>} : vector<1x128xbf16>, vector<128x384xbf16>, vector<1x384xf32> -> vector<1x384xf32>
    %209 = vector.extract_strided_slice %206 {offsets = [0, 0], sizes = [1, 256], strides = [1, 1]} : vector<1x384xf32> to vector<1x256xf32>
    %210 = vector.extract_strided_slice %208 {offsets = [0, 0], sizes = [1, 256], strides = [1, 1]} : vector<1x384xf32> to vector<1x256xf32>
    %211 = arith.addf %209, %210 : vector<1x256xf32>
    %212 = arith.negf %211 : vector<1x256xf32>
    %213 = math.exp %212 : vector<1x256xf32>
    %cst_28 = arith.constant 1.000000e+00 : f32
    %214 = vector.broadcast %cst_28 : f32 to vector<1x256xf32>
    %215 = arith.addf %214, %213 : vector<1x256xf32>
    %216 = arith.divf %214, %215 : vector<1x256xf32>
    %217 = vector.extract_strided_slice %216 {offsets = [0, 0], sizes = [1, 128], strides = [1, 1]} : vector<1x256xf32> to vector<1x128xf32>
    %218 = vector.extract_strided_slice %216 {offsets = [0, 128], sizes = [1, 128], strides = [1, 1]} : vector<1x256xf32> to vector<1x128xf32>
    %219 = vector.extract_strided_slice %206 {offsets = [0, 256], sizes = [1, 128], strides = [1, 1]} : vector<1x384xf32> to vector<1x128xf32>
    %220 = vector.extract_strided_slice %208 {offsets = [0, 256], sizes = [1, 128], strides = [1, 1]} : vector<1x384xf32> to vector<1x128xf32>
    %221 = arith.addf %220, %10 : vector<1x128xf32>
    %222 = arith.mulf %217, %221 : vector<1x128xf32>
    %223 = arith.addf %219, %222 : vector<1x128xf32>
    %224 = math.tanh %223 : vector<1x128xf32>
    %cst_29 = arith.constant 1.000000e+00 : f32
    %225 = vector.broadcast %cst_29 : f32 to vector<1x128xf32>
    %226 = arith.subf %225, %218 : vector<1x128xf32>
    %227 = arith.mulf %226, %224 : vector<1x128xf32>
    %228 = arith.mulf %218, %203 : vector<1x128xf32>
    %229 = arith.addf %227, %228 : vector<1x128xf32>
    %c0_30 = arith.constant 0 : index
    %c0_31 = arith.constant 0 : index
    %230 = vector.load %arg2[%c0_30, %c0_31] : memref<1x128xf32, #tpu.memory_space<vmem>>, vector<1x128xf32>
    tpu.vector_store %arg2[%c0_30, %c0_31], %229 {strides = array<i32>} : memref<1x128xf32, #tpu.memory_space<vmem>>, vector<1x128xf32>,
    return
  }
}

</mosaic_0001>

<bundles_post_ra>
// kernel: sentence_embedding_forward.1
= control target key start
LH: loop header
LB: loop body
LE: loop exit
PB: predicated region body
PF: predicated region fallthrough
CT: control target
= control target key end

     0   :  { %7 = vsyncpa [#allocation3], 0  ;;  %s1548_s9 = smov [#allocation2]   ;;  %s2012_s0 = inlined_call_operand.vmem [shape: s32[8,1], index: 0, kind: input, shape index: {}]   ;;  %s2013_s1 = inlined_call_operand.hbm [shape: f32[145,384], index: 1, kind: input, shape index: {}]   ;;  %s2014_s2 = inlined_call_operand.vmem [shape: f32[1,128], index: 2, kind: output, shape index: {}]  }
   0x1   :  { %s15_s10 = sshll.u32 %s1548_s9, 4  ;;  %s1524_s13 = scalar_lea.hbm %s2013_s1, 7296  ;;  %s16_s10 = int_to_ptr.vmem [resolvable:$true] %s15_s10 }
   0x2   :  { %p1525_p0 = scmp.ne.s32.totalorder %s2013_s1, %s1524_s13  ;;  %p1528_p1 = scmp.lt.u32.totalorder %s1524_s13, %s2013_s1 }
   0x4   :  { %p1530_p2 = pnand %p1528_p1, %p1525_p0 }
   0x6   :  { %1533 = shalt.err (!%p1530_p2)
}
   0x7   :  { %s1534_s18 = scalar_lea.vmem %s16_s10, 7296  ;;  %p1539_p4 = scmp.lt.s32.totalorder %s16_s10, %s16_s10 }
   0x8   :  { %p1535_p3 = scmp.ne.s32.totalorder %s16_s10, %s1534_s18  ;;  %p1540_p5 = scmp.lt.s32.totalorder %s1534_s18, %s1534_s18 }
   0xa   :  { %p1541_p6 = por %p1540_p5, %p1539_p4 }
   0xc   :  { %p1542_p7 = pnand %p1541_p6, %p1535_p3 }
   0xe   :  { %1545 = shalt.err (!%p1542_p7)
}
   0xf   :  { %s1549_s19 = smov 384   ;;  %s1550_s20 = smov 24  }
  0x10   :  { %21 = dma.hbm_to_vmem [thread:$0]  %s2013_s1, 7296, %s16_s10, [#allocation3], %s1549_s19, %s1549_s19, %s1550_s20  }
  0x11   :  { %1546 = dma.done.wait [#allocation3], 7296  }
  0x12   :  { %1547 = vsyncadd [#allocation3], 4294960000  ;;  %v1551_v0 = vmov 0   ;;  %v1552_v1 = vmov 0.0|0.0   ;;  %v1553_v2 = vmov 0.0   ;;  %v26_v3 = vld [vmem:[%s2012_s0] sm:$0xff]  ;;  %v27_v13 = vlaneseq }
  0x13   :  { %1443 = vset.pattern.permute.xlu0 %v1551_v0  ;;  %1433 = vmatprep.subr.bf16.mxu1 %v1552_v1  ;;  %v36_v4 = vld [vmem:[#allocation2 + $0x8] sm:$0xff]  ;;  %v39_v5 = vld [vmem:[#allocation2 + $0x20] sm:$0xff]  ;;  %v38_v8 = vld [vmem:[#allocation2 + $0x18] sm:$0xff]  ;;  %vm1554_vm0 = vmmov 0   ;;  %vm41_vm1 = vcmask 130048  }
  0x14   :  { %109 = vmatprep.mubr.f32.mxu0 %v1553_v2  ;;  %30 = vperm.xlu0 %1443, %v26_v3   ;;  %v1429_v6 = vpack.c.bf16 %v39_v5, %v36_v4  ;;  %v35_v7 = vld [vmem:[#allocation2] sm:$0xff]  ;;  %v37_v9 = vld [vmem:[#allocation2 + $0x10] sm:$0xff]  ;;  %v40_v11 = vld [vmem:[#allocation2 + $0x28] sm:$0xff]  ;;  %v1590_v14 = vand.u32 127, %v27_v13 }
  0x15   :  { %v1431_v10 = vpack.c.bf16 %v38_v8, %v35_v7  ;;  %1286 = vmatprep.mubr.msk.f32.mxu1 %vm1554_vm0, %v1553_v2  ;;  %v1434_v12 = vpack.c.bf16 %v40_v11, %v37_v9  ;;  %v187_v17 = vld [vmem:[#allocation2 + $0x38] sm:$0xff]  ;;  %v190_v18 = vld [vmem:[#allocation2 + $0x50] sm:$0xff]  ;;  %v189_v21 = vld [vmem:[#allocation2 + $0x48] sm:$0xff] }
  0x16   :  { %1430 = vmatprep.subr.bf16.mxu0 %v1429_v6  ;;  %v1597_v19 = vpack.c.bf16 %v190_v18, %v187_v17  ;;  %v186_v20 = vld [vmem:[#allocation2 + $0x30] sm:$0xff]  ;;  %v188_v22 = vld [vmem:[#allocation2 + $0x40] sm:$0xff]  ;;  %v191_v24 = vld [vmem:[#allocation2 + $0x58] sm:$0xff]  ;;  %vm297_vm3 = vcmp.lt.s32.totalorder %v1590_v14, 32 }
  0x17   :  { %1432 = vmatpush1.bf16.msra.mxu0 %v1431_v10  ;;  %1435 = vmatpush3.bf16.msra.mxu1 %v1434_v12  ;;  %v1599_v23 = vpack.c.bf16 %v189_v21, %v186_v20  ;;  %v1602_v25 = vpack.c.bf16 %v191_v24, %v188_v22  ;;  %v193_v26 = vld [vmem:[#allocation2 + $0x68] sm:$0xff]  ;;  %v196_v27 = vld [vmem:[#allocation2 + $0x80] sm:$0xff]  ;;  %v195_v30 = vld [vmem:[#allocation2 + $0x78] sm:$0xff] }
  0x18   :  { %1289 = vmatprep.subr.bf16.mxu1 %v1553_v2  ;;  %339 = vmatprep.subr.bf16.mxu0 %v1597_v19  ;;  %v1606_v28 = vpack.c.bf16 %v196_v27, %v193_v26  ;;  %v192_v29 = vld [vmem:[#allocation2 + $0x60] sm:$0xff]  ;;  %v194_v32 = vld [vmem:[#allocation2 + $0x70] sm:$0xff]  ;;  %v197_v33 = vld [vmem:[#allocation2 + $0x88] sm:$0xff] }
  0x19   :  { %v1609_v31 = vpack.c.bf16 %v195_v30, %v192_v29  ;;  %v1612_v34 = vpack.c.bf16 %v197_v33, %v194_v32  ;;  %v199_v35 = vld [vmem:[#allocation2 + $0x98] sm:$0xff]  ;;  %v202_v36 = vld [vmem:[#allocation2 + $0xb0] sm:$0xff]  ;;  %v201_v39 = vld [vmem:[#allocation2 + $0xa8] sm:$0xff]  ;;  %v260_v33 = vadd.s32 256, %v1590_v14 }
  0x1a   :  { %v1616_v37 = vpack.c.bf16 %v202_v36, %v199_v35  ;;  %v198_v38 = vld [vmem:[#allocation2 + $0x90] sm:$0xff]  ;;  %v200_v40 = vld [vmem:[#allocation2 + $0xa0] sm:$0xff]  ;;  %v203_v42 = vld [vmem:[#allocation2 + $0xb8] sm:$0xff]  ;;  %v259_v35 = vadd.s32 128, %v1590_v14 }
  0x1b   :  { %v1619_v41 = vpack.c.bf16 %v201_v39, %v198_v38  ;;  %v1622_v43 = vpack.c.bf16 %v203_v42, %v200_v40  ;;  %v205_v44 = vld [vmem:[#allocation2 + $0xc8] sm:$0xff]  ;;  %v208_v45 = vld [vmem:[#allocation2 + $0xe0] sm:$0xff]  ;;  %v207_v48 = vld [vmem:[#allocation2 + $0xd8] sm:$0xff]  ;;  %v279_v36 = vand.u32 127, %v260_v33 }
  0x1c   :  { %v1626_v46 = vpack.c.bf16 %v208_v45, %v205_v44  ;;  %v204_v47 = vld [vmem:[#allocation2 + $0xc0] sm:$0xff]  ;;  %v206_v49 = vld [vmem:[#allocation2 + $0xd0] sm:$0xff]  ;;  %v209_v51 = vld [vmem:[#allocation2 + $0xe8] sm:$0xff]  ;;  %v272_v38 = vand.u32 127, %v259_v35 }
  0x1d   :  { %v1629_v50 = vpack.c.bf16 %v207_v48, %v204_v47  ;;  %v1632_v52 = vpack.c.bf16 %v209_v51, %v206_v49  ;;  %v211_v53 = vld [vmem:[#allocation2 + $0xf8] sm:$0xff]  ;;  %v214_v54 = vld [vmem:[#allocation2 + $0x110] sm:$0xff]  ;;  %v213_v57 = vld [vmem:[#allocation2 + $0x108] sm:$0xff]  ;;  %vm1681_vm4 = vcmp.lt.s32.totalorder %v279_v36, 32 }
  0x1e   :  { %v1636_v55 = vpack.c.bf16 %v214_v54, %v211_v53  ;;  %v210_v56 = vld [vmem:[#allocation2 + $0xf0] sm:$0xff]  ;;  %v212_v58 = vld [vmem:[#allocation2 + $0x100] sm:$0xff]  ;;  %v215_v60 = vld [vmem:[#allocation2 + $0x118] sm:$0xff]  ;;  %vm1685_vm5 = vcmp.lt.s32.totalorder %v272_v38, 32 }
  0x1f   :  { %v1639_v59 = vpack.c.bf16 %v213_v57, %v210_v56  ;;  %v217_v61 = vld [vmem:[#allocation2 + $0x128] sm:$0xff]  ;;  %v220_v62 = vld [vmem:[#allocation2 + $0x140] sm:$0xff]  ;;  %v1642_v63 = vpack.c.bf16 %v215_v60, %v212_v58  ;;  %v219_v4 = vld [vmem:[#allocation2 + $0x138] sm:$0xff] }
  0x20   :  { %v1644_v1 = vpack.c.bf16 %v220_v62, %v217_v61  ;;  %v216_v3 = vld [vmem:[#allocation2 + $0x120] sm:$0xff]  ;;  %v218_v5 = vld [vmem:[#allocation2 + $0x130] sm:$0xff]  ;;  %v221_v7 = vld [vmem:[#allocation2 + $0x148] sm:$0xff] }
  0x21   :  { %v1647_v6 = vpack.c.bf16 %v219_v4, %v216_v3  ;;  %v223_v8 = vld [vmem:[#allocation2 + $0x158] sm:$0xff]  ;;  %v226_v9 = vld [vmem:[#allocation2 + $0x170] sm:$0xff]  ;;  %v1651_v10 = vpack.c.bf16 %v221_v7, %v218_v5  ;;  %v225_v13 = vld [vmem:[#allocation2 + $0x168] sm:$0xff] }
  0x22   :  { %v1653_v11 = vpack.c.bf16 %v226_v9, %v223_v8  ;;  %v222_v12 = vld [vmem:[#allocation2 + $0x150] sm:$0xff]  ;;  %v229_v17 = vld [vmem:[#allocation2 + $0x188] sm:$0xff]  ;;  %v232_v18 = vld [vmem:[#allocation2 + $0x1a0] sm:$0xff] }
  0x23   :  { %v1657_v20 = vpack.c.bf16 %v225_v13, %v222_v12  ;;  %v1663_v22 = vpack.c.bf16 %v232_v18, %v229_v17  ;;  %v228_v24 = vld [vmem:[#allocation2 + $0x180] sm:$0xff]  ;;  %v231_v26 = vld [vmem:[#allocation2 + $0x198] sm:$0xff]  ;;  %v230_v27 = vld [vmem:[#allocation2 + $0x190] sm:$0xff] }
  0x24   :  { %v233_v29 = vld [vmem:[#allocation2 + $0x1a8] sm:$0xff]  ;;  %v1667_v30 = vpack.c.bf16 %v231_v26, %v228_v24  ;;  %v1735_v35 = vld [vmem:[#allocation2 + $0x1c0] ss:$0 sm:$0xff] }
  0x25   :  { %v1671_v32 = vpack.c.bf16 %v233_v29, %v230_v27 }
  0x93   :  { %v31_v15 = vpop.permute.xlu0 %30 }
  0x94   :  { %vm32_vm2 = vcmp.eq.s32.totalorder %v31_v15, %v1590_v14  ;;  %v224_v15 = vld [vmem:[#allocation2 + $0x160] sm:$0xff] }
  0x95   :  { %v1197_v16 = vsel %vm32_vm2, 1.0, %v1553_v2 }
  0x96   :  { %1198 = vmatmul.mubr.msk.f32.vlgmr.msra.gmra.mrb[0].mxu0 %vm41_vm1, %v1197_v16  ;;  %1287 = vmatmul.mubr.msk.f32.vlgmr.msra.gmra.mrb[0].mxu1 %vm41_vm1, %v1197_v16  ;;  %v227_v16 = vld [vmem:[#allocation2 + $0x178] sm:$0xff] }
  0x97   :  { %371 = vmatprep.mubr.bf16.mxu0 %v1551_v0  ;;  %1305 = vmatprep.mubr.msk.bf16.mxu1 %vm1554_vm0, %v1553_v2  ;;  %v1661_v21 = vpack.c.bf16 %v227_v16, %v224_v15 }
  0x98   :  { %340 = vmatpush1.bf16.msra.mxu0 %v1599_v23  ;;  %1290 = vmatpush3.bf16.msra.mxu1 %v1602_v25 }
  0x99   :  { %1291 = vmatprep.subr.bf16.mxu1 %v1553_v2  ;;  %341 = vmatprep.subr.bf16.mxu0 %v1606_v28 }
  0x9c   :  { %342 = vmatpush1.bf16.msra.mxu0 %v1609_v31  ;;  %1292 = vmatpush3.bf16.msra.mxu1 %v1612_v34 }
  0x9d   :  { %1293 = vmatprep.subr.bf16.mxu1 %v1553_v2  ;;  %343 = vmatprep.subr.bf16.mxu0 %v1616_v37 }
  0xa0   :  { %344 = vmatpush1.bf16.msra.mxu0 %v1619_v41  ;;  %1294 = vmatpush3.bf16.msra.mxu1 %v1622_v43 }
  0xa1   :  { %1295 = vmatprep.subr.bf16.mxu1 %v1553_v2  ;;  %345 = vmatprep.subr.bf16.mxu0 %v1626_v46 }
  0xa4   :  { %346 = vmatpush1.bf16.msra.mxu0 %v1629_v50  ;;  %1296 = vmatpush3.bf16.msra.mxu1 %v1632_v52 }
  0xa5   :  { %1297 = vmatprep.subr.bf16.mxu1 %v1553_v2  ;;  %347 = vmatprep.subr.bf16.mxu0 %v1636_v55 }
  0xa8   :  { %348 = vmatpush1.bf16.msra.mxu0 %v1639_v59  ;;  %1298 = vmatpush3.bf16.msra.mxu1 %v1642_v63 }
  0xa9   :  { %349 = vmatprep.subr.bf16.mxu0 %v1644_v1  ;;  %1299 = vmatprep.subr.bf16.mxu1 %v1553_v2 }
  0xac   :  { %350 = vmatpush1.bf16.msra.mxu0 %v1647_v6  ;;  %1300 = vmatpush3.bf16.msra.mxu1 %v1651_v10 }
  0xad   :  { %351 = vmatprep.subr.bf16.mxu0 %v1653_v11  ;;  %1301 = vmatprep.subr.bf16.mxu1 %v1553_v2 }
  0xb0   :  { %352 = vmatpush1.bf16.msra.mxu0 %v1657_v20  ;;  %1302 = vmatpush3.bf16.msra.mxu1 %v1661_v21 }
  0xb1   :  { %353 = vmatprep.subr.bf16.mxu0 %v1663_v22  ;;  %1303 = vmatprep.subr.bf16.mxu1 %v1553_v2 }
  0xb4   :  { %354 = vmatpush1.bf16.msra.mxu0 %v1667_v30  ;;  %1304 = vmatpush3.bf16.msra.mxu1 %v1671_v32 }
  0xb5   :  { %468 = vmatprep.subr.bf16.mxu0 %v1597_v19  ;;  %1309 = vmatprep.subr.bf16.mxu1 %v1553_v2 }
 0x169   :  { %v111_v40 = vpop.f32.mrb[0].mxu0  ;;  %v182_v42 = vpop.f32.mrb[0].mxu1 }
 0x16a   :  { %v303_v45 = vrot.slane %v111_v40, 7  ;;  %v113_v47 = vpop.f32.mrb[1].mxu0  ;;  %v1288_v48 = vpop.f32.mrb[1].mxu1  ;;  %v329_v49 = vrot.slane %v111_v40, 5  ;;  %v331_v51 = vrot.slane %v182_v42, 5  ;;  %v454_v56 = vrot.slane %v111_v40, 3 }
 0x16b   :  { %v304_v53 = vrot.slane %v113_v47, 7  ;;  %v330_v54 = vrot.slane %v113_v47, 5  ;;  %v456_v57 = vrot.slane %v182_v42, 3  ;;  %v455_v7 = vrot.slane %v113_v47, 3 }
 0x16c   :  { %v1691_v58 = vsel %vm297_vm3, %v111_v40, %v303_v45  ;;  %v1695_v60 = vsel %vm297_vm3, %v111_v40, %v329_v49  ;;  %v1699_v61 = vsel %vm1681_vm4, %v182_v42, %v331_v51  ;;  %v1708_v4 = vsel %vm297_vm3, %v111_v40, %v454_v56 }
 0x16d   :  { %v1200_v62 = vmul.f32 -1.442695, %v1691_v58  ;;  %v1704_v3 = vsel %vm1685_vm5, %v113_v47, %v330_v54  ;;  %v1712_v5 = vsel %vm1681_vm4, %v182_v42, %v456_v57  ;;  %v583_v8 = vrot.slane %v111_v40, 1 }
 0x16e   :  { %v1716_v9 = vsel %vm1685_vm5, %v113_v47, %v304_v53  ;;  %v585_v12 = vrot.slane %v182_v42, 1  ;;  %v584_v13 = vrot.slane %v113_v47, 1  ;;  %v1720_v15 = vsel %vm1685_vm5, %v113_v47, %v455_v7 }
 0x16f   :  { %1444 = vpow2.f32 %v1200_v62  ;;  %v1724_v16 = vsel %vm297_vm3, %v111_v40, %v583_v8  ;;  %v1201_v24 = vmul.f32 -1.442695, %v1716_v9  ;;  %v305_v14 = vrot.slane %v182_v42, 7 }
 0x170   :  { %v1728_v17 = vsel %vm1681_vm4, %v182_v42, %v585_v12  ;;  %v1732_v18 = vsel %vm1685_vm5, %v113_v47, %v584_v13 }
 0x171   :  { %1446 = vpow2.f32 %v1201_v24  ;;  %v1740_v40 = vsel %vm1681_vm4, %v182_v42, %v305_v14 }
 0x179   :  { %v1445_v26 = vpop.eup %1444 }
 0x17a   :  { %v318_v27 = vadd.f32 1.0, %v1445_v26 }
 0x17b   :  { %v1447_v29 = vpop.eup %1446 }
 0x17c   :  { %1448 = vrcp.f32 %v318_v27  ;;  %v319_v33 = vadd.f32 1.0, %v1447_v29 }
 0x17e   :  { %1450 = vrcp.f32 %v319_v33 }
 0x186   :  { %v1449_v36 = vpop.eup %1448 }
 0x187   :  { %v324_v38 = vmul.f32 %v1449_v36, %v1735_v35 }
 0x188   :  { %v1451_v45 = vpop.eup %1450 }
 0x189   :  { %v325_v44 = vadd.f32 %v324_v38, %v1740_v40  ;;  %v327_v47 = vsub.f32 1.0, %v1451_v45 }
 0x18b   :  { %1452 = vtanh.f32 %v325_v44 }
 0x195   :  { %v1453_v48 = vpop.eup %1452 }
 0x196   :  { %v1743_v49 = vmul.f32 %v1453_v48, %v327_v47 }
 0x198   :  { %v338_v51 = vpack.c.bf16 %v1743_v49, %v1743_v49  ;;  %v450_v47 = vrot.slane %v1743_v49, 7 }
 0x19a   :  { %372 = vmatmul.mubr.bf16.vlgmr.msra.gmra.mrb[4].mxu0 %v338_v51  ;;  %1306 = vmatmul.mubr.bf16.vlgmr.msra.gmra.mrb[4].mxu1 %v338_v51 }
 0x19b   :  { %469 = vmatpush1.bf16.msra.mxu0 %v1599_v23  ;;  %1310 = vmatpush3.bf16.msra.mxu1 %v1602_v25 }
 0x19c   :  { %470 = vmatprep.subr.bf16.mxu0 %v1606_v28  ;;  %1311 = vmatprep.subr.bf16.mxu1 %v1553_v2 }
 0x19d   :  { %500 = vmatprep.mubr.bf16.mxu0 %v1551_v0  ;;  %1325 = vmatprep.mubr.msk.bf16.mxu1 %vm1554_vm0, %v1553_v2 }
 0x19f   :  { %471 = vmatpush1.bf16.msra.mxu0 %v1609_v31  ;;  %1312 = vmatpush3.bf16.msra.mxu1 %v1612_v34 }
 0x1a0   :  { %472 = vmatprep.subr.bf16.mxu0 %v1616_v37  ;;  %1313 = vmatprep.subr.bf16.mxu1 %v1553_v2 }
 0x1a3   :  { %473 = vmatpush1.bf16.msra.mxu0 %v1619_v41  ;;  %1314 = vmatpush3.bf16.msra.mxu1 %v1622_v43 }
 0x1a4   :  { %474 = vmatprep.subr.bf16.mxu0 %v1626_v46  ;;  %1315 = vmatprep.subr.bf16.mxu1 %v1553_v2 }
 0x1a7   :  { %475 = vmatpush1.bf16.msra.mxu0 %v1629_v50  ;;  %1316 = vmatpush3.bf16.msra.mxu1 %v1632_v52 }
 0x1a8   :  { %476 = vmatprep.subr.bf16.mxu0 %v1636_v55  ;;  %1317 = vmatprep.subr.bf16.mxu1 %v1553_v2 }
 0x1ab   :  { %477 = vmatpush1.bf16.msra.mxu0 %v1639_v59  ;;  %1318 = vmatpush3.bf16.msra.mxu1 %v1642_v63 }
 0x1ac   :  { %478 = vmatprep.subr.bf16.mxu0 %v1644_v1  ;;  %1319 = vmatprep.subr.bf16.mxu1 %v1553_v2 }
 0x1af   :  { %479 = vmatpush1.bf16.msra.mxu0 %v1647_v6  ;;  %1320 = vmatpush3.bf16.msra.mxu1 %v1651_v10 }
 0x1b0   :  { %480 = vmatprep.subr.bf16.mxu0 %v1653_v11  ;;  %1321 = vmatprep.subr.bf16.mxu1 %v1553_v2 }
 0x1b3   :  { %481 = vmatpush1.bf16.msra.mxu0 %v1657_v20  ;;  %1322 = vmatpush3.bf16.msra.mxu1 %v1661_v21 }
 0x1b4   :  { %482 = vmatprep.subr.bf16.mxu0 %v1663_v22  ;;  %1323 = vmatprep.subr.bf16.mxu1 %v1553_v2 }
 0x1b7   :  { %483 = vmatpush1.bf16.msra.mxu0 %v1667_v30  ;;  %1324 = vmatpush3.bf16.msra.mxu1 %v1671_v32 }
 0x1b8   :  { %596 = vmatprep.subr.bf16.mxu0 %v1597_v19  ;;  %1329 = vmatprep.subr.bf16.mxu1 %v1553_v2 }
 0x26d   :  { %v373_v39 = vpop.f32.mrb[4].mxu0  ;;  %v414_v42 = vpop.f32.mrb[4].mxu1 }
 0x26e   :  { %v422_v53 = vrot.slane %v373_v39, 7  ;;  %v375_v54 = vpop.f32.mrb[5].mxu0  ;;  %v1307_v56 = vpop.f32.mrb[5].mxu1  ;;  %v440_v38 = vadd.f32 %v414_v42, %v1735_v35 }
 0x26f   :  { %v423_v57 = vrot.slane %v375_v54, 7  ;;  %v377_v62 = vpop.f32.mrb[6].mxu0  ;;  %v417_v7 = vpop.f32.mrb[6].mxu1 }
 0x270   :  { %v426_v8 = vadd.f32 %v422_v53, %v1695_v60  ;;  %v378_v12 = vpop.f32.mrb[7].mxu0  ;;  %v1308_v13 = vpop.f32.mrb[7].mxu1  ;;  %v442_v44 = vrot.slane %v440_v38, 7 }
 0x271   :  { %v427_v24 = vadd.f32 %v423_v57, %v1704_v3 }
 0x272   :  { %v1202_v26 = vmul.f32 -1.442695, %v426_v8 }
 0x273   :  { %v1203_v27 = vmul.f32 -1.442695, %v427_v24 }
 0x274   :  { %1454 = vpow2.f32 %v1202_v26 }
 0x275   :  { %1456 = vpow2.f32 %v1203_v27 }
 0x27e   :  { %v1455_v29 = vpop.eup %1454 }
 0x27f   :  { %v1457_v33 = vpop.eup %1456  ;;  %v434_v14 = vadd.f32 1.0, %v1455_v29 }
 0x280   :  { %v435_v36 = vadd.f32 1.0, %v1457_v33 }
 0x281   :  { %1458 = vrcp.f32 %v434_v14 }
 0x282   :  { %1460 = vrcp.f32 %v435_v36 }
 0x28b   :  { %v1459_v45 = vpop.eup %1458 }
 0x28c   :  { %v1461_v48 = vpop.eup %1460  ;;  %v444_v51 = vmul.f32 %v1459_v45, %v442_v44 }
 0x28d   :  { %v452_v39 = vmul.f32 %v1461_v48, %v450_v47  ;;  %v447_v54 = vsub.f32 1.0, %v1461_v48 }
 0x28e   :  { %v445_v53 = vadd.f32 %v444_v51, %v1699_v61 }
 0x290   :  { %1462 = vtanh.f32 %v445_v53 }
 0x29a   :  { %v1463_v56 = vpop.eup %1462 }
 0x29b   :  { %v448_v57 = vmul.f32 %v1463_v56, %v447_v54 }
 0x29d   :  { %v1787_v62 = vadd.f32 %v452_v39, %v448_v57 }
 0x29f   :  { %v463_v7 = vpack.c.bf16 %v1787_v62, %v1787_v62  ;;  %v579_v57 = vrot.slane %v1787_v62, 7 }
 0x2a1   :  { %v465_v8 = vshrl.u32 %v463_v7, 16 }
 0x2a3   :  { %501 = vmatmul.mubr.bf16.vlgmr.msra.gmra.mrb[8].mxu0 %v465_v8  ;;  %1326 = vmatmul.mubr.bf16.vlgmr.msra.gmra.mrb[8].mxu1 %v465_v8 }
 0x2a4   :  { %597 = vmatpush1.bf16.msra.mxu0 %v1599_v23  ;;  %1330 = vmatpush3.bf16.msra.mxu1 %v1602_v25 }
 0x2a5   :  { %598 = vmatprep.subr.bf16.mxu0 %v1606_v28  ;;  %1331 = vmatprep.subr.bf16.mxu1 %v1553_v2 }
 0x2a6   :  { %628 = vmatprep.mubr.bf16.mxu0 %v1551_v0  ;;  %1345 = vmatprep.mubr.msk.bf16.mxu1 %vm1554_vm0, %v1553_v2 }
 0x2a8   :  { %599 = vmatpush1.bf16.msra.mxu0 %v1609_v31  ;;  %1332 = vmatpush3.bf16.msra.mxu1 %v1612_v34 }
 0x2a9   :  { %600 = vmatprep.subr.bf16.mxu0 %v1616_v37  ;;  %1333 = vmatprep.subr.bf16.mxu1 %v1553_v2 }
 0x2ac   :  { %601 = vmatpush1.bf16.msra.mxu0 %v1619_v41  ;;  %1334 = vmatpush3.bf16.msra.mxu1 %v1622_v43 }
 0x2ad   :  { %602 = vmatprep.subr.bf16.mxu0 %v1626_v46  ;;  %1335 = vmatprep.subr.bf16.mxu1 %v1553_v2 }
 0x2b0   :  { %603 = vmatpush1.bf16.msra.mxu0 %v1629_v50  ;;  %1336 = vmatpush3.bf16.msra.mxu1 %v1632_v52 }
 0x2b1   :  { %604 = vmatprep.subr.bf16.mxu0 %v1636_v55  ;;  %1337 = vmatprep.subr.bf16.mxu1 %v1553_v2 }
 0x2b4   :  { %605 = vmatpush1.bf16.msra.mxu0 %v1639_v59  ;;  %1338 = vmatpush3.bf16.msra.mxu1 %v1642_v63 }
 0x2b5   :  { %606 = vmatprep.subr.bf16.mxu0 %v1644_v1  ;;  %1339 = vmatprep.subr.bf16.mxu1 %v1553_v2 }
 0x2b8   :  { %607 = vmatpush1.bf16.msra.mxu0 %v1647_v6  ;;  %1340 = vmatpush3.bf16.msra.mxu1 %v1651_v10 }
 0x2b9   :  { %608 = vmatprep.subr.bf16.mxu0 %v1653_v11  ;;  %1341 = vmatprep.subr.bf16.mxu1 %v1553_v2 }
 0x2bc   :  { %609 = vmatpush1.bf16.msra.mxu0 %v1657_v20  ;;  %1342 = vmatpush3.bf16.msra.mxu1 %v1661_v21 }
 0x2bd   :  { %610 = vmatprep.subr.bf16.mxu0 %v1663_v22  ;;  %1343 = vmatprep.subr.bf16.mxu1 %v1553_v2 }
 0x2c0   :  { %611 = vmatpush1.bf16.msra.mxu0 %v1667_v30  ;;  %1344 = vmatpush3.bf16.msra.mxu1 %v1671_v32 }
 0x2c1   :  { %717 = vmatprep.subr.bf16.mxu0 %v1597_v19  ;;  %1349 = vmatprep.subr.bf16.mxu1 %v1553_v2 }
 0x376   :  { %v502_v49 = vpop.f32.mrb[8].mxu0  ;;  %v543_v42 = vpop.f32.mrb[8].mxu1 }
 0x377   :  { %v551_v12 = vrot.slane %v502_v49, 6  ;;  %v504_v13 = vpop.f32.mrb[9].mxu0  ;;  %v1327_v24 = vpop.f32.mrb[9].mxu1  ;;  %v569_v53 = vadd.f32 %v543_v42, %v1735_v35 }
 0x378   :  { %v552_v26 = vrot.slane %v504_v13, 6  ;;  %v506_v27 = vpop.f32.mrb[10].mxu0  ;;  %v546_v29 = vpop.f32.mrb[10].mxu1 }
 0x379   :  { %v555_v33 = vadd.f32 %v551_v12, %v1708_v4  ;;  %v507_v14 = vpop.f32.mrb[11].mxu0  ;;  %v1328_v36 = vpop.f32.mrb[11].mxu1  ;;  %v571_v54 = vrot.slane %v569_v53, 6 }
 0x37a   :  { %v556_v38 = vadd.f32 %v552_v26, %v1720_v15 }
 0x37b   :  { %v1204_v44 = vmul.f32 -1.442695, %v555_v33 }
 0x37c   :  { %v1205_v45 = vmul.f32 -1.442695, %v556_v38 }
 0x37d   :  { %1464 = vpow2.f32 %v1204_v44 }
 0x37e   :  { %1466 = vpow2.f32 %v1205_v45 }
 0x387   :  { %v1465_v47 = vpop.eup %1464 }
 0x388   :  { %v1467_v48 = vpop.eup %1466  ;;  %v563_v51 = vadd.f32 1.0, %v1465_v47 }
 0x389   :  { %v564_v39 = vadd.f32 1.0, %v1467_v48 }
 0x38a   :  { %1468 = vrcp.f32 %v563_v51 }
 0x38b   :  { %1470 = vrcp.f32 %v564_v39 }
 0x394   :  { %v1469_v56 = vpop.eup %1468 }
 0x395   :  { %v1471_v7 = vpop.eup %1470  ;;  %v573_v8 = vmul.f32 %v1469_v56, %v571_v54 }
 0x396   :  { %v581_v49 = vmul.f32 %v1471_v7, %v579_v57  ;;  %v576_v13 = vsub.f32 1.0, %v1471_v7 }
 0x397   :  { %v574_v12 = vadd.f32 %v573_v8, %v1712_v5 }
 0x399   :  { %1472 = vtanh.f32 %v574_v12 }
 0x3a3   :  { %v1473_v24 = vpop.eup %1472 }
 0x3a4   :  { %v577_v26 = vmul.f32 %v1473_v24, %v576_v13 }
 0x3a6   :  { %v1831_v27 = vadd.f32 %v581_v49, %v577_v26 }
 0x3a8   :  { %v592_v29 = vpack.c.bf16 %v1831_v27, %v1831_v27  ;;  %v707_v26 = vrot.slane %v1831_v27, 7 }
 0x3aa   :  { %v594_v33 = vrot.slane %v592_v29, 1 }
 0x3ac   :  { %629 = vmatmul.mubr.bf16.vlgmr.msra.gmra.mrb[12].mxu0 %v594_v33  ;;  %1346 = vmatmul.mubr.bf16.vlgmr.msra.gmra.mrb[12].mxu1 %v594_v33 }
 0x3ad   :  { %718 = vmatpush1.bf16.msra.mxu0 %v1599_v23  ;;  %1350 = vmatpush3.bf16.msra.mxu1 %v1602_v25 }
 0x3ae   :  { %719 = vmatprep.subr.bf16.mxu0 %v1606_v28  ;;  %1351 = vmatprep.subr.bf16.mxu1 %v1553_v2 }
 0x3af   :  { %749 = vmatprep.mubr.bf16.mxu0 %v1551_v0  ;;  %1365 = vmatprep.mubr.msk.bf16.mxu1 %vm1554_vm0, %v1553_v2 }
 0x3b1   :  { %720 = vmatpush1.bf16.msra.mxu0 %v1609_v31  ;;  %1352 = vmatpush3.bf16.msra.mxu1 %v1612_v34 }
 0x3b2   :  { %721 = vmatprep.subr.bf16.mxu0 %v1616_v37  ;;  %1353 = vmatprep.subr.bf16.mxu1 %v1553_v2 }
 0x3b5   :  { %722 = vmatpush1.bf16.msra.mxu0 %v1619_v41  ;;  %1354 = vmatpush3.bf16.msra.mxu1 %v1622_v43 }
 0x3b6   :  { %723 = vmatprep.subr.bf16.mxu0 %v1626_v46  ;;  %1355 = vmatprep.subr.bf16.mxu1 %v1553_v2 }
 0x3b9   :  { %724 = vmatpush1.bf16.msra.mxu0 %v1629_v50  ;;  %1356 = vmatpush3.bf16.msra.mxu1 %v1632_v52 }
 0x3ba   :  { %725 = vmatprep.subr.bf16.mxu0 %v1636_v55  ;;  %1357 = vmatprep.subr.bf16.mxu1 %v1553_v2 }
 0x3bd   :  { %726 = vmatpush1.bf16.msra.mxu0 %v1639_v59  ;;  %1358 = vmatpush3.bf16.msra.mxu1 %v1642_v63 }
 0x3be   :  { %727 = vmatprep.subr.bf16.mxu0 %v1644_v1  ;;  %1359 = vmatprep.subr.bf16.mxu1 %v1553_v2 }
 0x3c1   :  { %728 = vmatpush1.bf16.msra.mxu0 %v1647_v6  ;;  %1360 = vmatpush3.bf16.msra.mxu1 %v1651_v10 }
 0x3c2   :  { %729 = vmatprep.subr.bf16.mxu0 %v1653_v11  ;;  %1361 = vmatprep.subr.bf16.mxu1 %v1553_v2 }
 0x3c5   :  { %730 = vmatpush1.bf16.msra.mxu0 %v1657_v20  ;;  %1362 = vmatpush3.bf16.msra.mxu1 %v1661_v21 }
 0x3c6   :  { %731 = vmatprep.subr.bf16.mxu0 %v1663_v22  ;;  %1363 = vmatprep.subr.bf16.mxu1 %v1553_v2 }
 0x3c9   :  { %732 = vmatpush1.bf16.msra.mxu0 %v1667_v30  ;;  %1364 = vmatpush3.bf16.msra.mxu1 %v1671_v32 }
 0x3ca   :  { %836 = vmatprep.subr.bf16.mxu0 %v1597_v19  ;;  %1369 = vmatprep.subr.bf16.mxu1 %v1553_v2 }
 0x47f   :  { %v630_v62 = vpop.f32.mrb[12].mxu0  ;;  %v671_v42 = vpop.f32.mrb[12].mxu1 }
 0x480   :  { %v679_v14 = vrot.slane %v630_v62, 5  ;;  %v632_v36 = vpop.f32.mrb[13].mxu0  ;;  %v1347_v38 = vpop.f32.mrb[13].mxu1  ;;  %v697_v12 = vadd.f32 %v671_v42, %v1735_v35 }
 0x481   :  { %v680_v44 = vrot.slane %v632_v36, 5  ;;  %v634_v45 = vpop.f32.mrb[14].mxu0  ;;  %v674_v47 = vpop.f32.mrb[14].mxu1 }
 0x482   :  { %v683_v48 = vadd.f32 %v679_v14, %v1724_v16  ;;  %v635_v51 = vpop.f32.mrb[15].mxu0  ;;  %v1348_v39 = vpop.f32.mrb[15].mxu1  ;;  %v699_v13 = vrot.slane %v697_v12, 5 }
 0x483   :  { %v684_v53 = vadd.f32 %v680_v44, %v1732_v18 }
 0x484   :  { %v1206_v54 = vmul.f32 -1.442695, %v683_v48 }
 0x485   :  { %v1207_v56 = vmul.f32 -1.442695, %v684_v53 }
 0x486   :  { %1474 = vpow2.f32 %v1206_v54 }
 0x487   :  { %1476 = vpow2.f32 %v1207_v56 }
 0x490   :  { %v1475_v57 = vpop.eup %1474 }
 0x491   :  { %v1477_v7 = vpop.eup %1476  ;;  %v691_v8 = vadd.f32 1.0, %v1475_v57 }
 0x492   :  { %v692_v49 = vadd.f32 1.0, %v1477_v7 }
 0x493   :  { %1478 = vrcp.f32 %v691_v8 }
 0x494   :  { %1480 = vrcp.f32 %v692_v49 }
 0x49d   :  { %v1479_v24 = vpop.eup %1478 }
 0x49e   :  { %v1481_v29 = vpop.eup %1480  ;;  %v701_v33 = vmul.f32 %v1479_v24, %v699_v13 }
 0x49f   :  { %v709_v62 = vmul.f32 %v1481_v29, %v707_v26  ;;  %v704_v36 = vsub.f32 1.0, %v1481_v29 }
 0x4a0   :  { %v702_v14 = vadd.f32 %v701_v33, %v1728_v17 }
 0x4a2   :  { %1482 = vtanh.f32 %v702_v14 }
 0x4ac   :  { %v1483_v38 = vpop.eup %1482 }
 0x4ad   :  { %v705_v44 = vmul.f32 %v1483_v38, %v704_v36 }
 0x4af   :  { %v1875_v45 = vadd.f32 %v709_v62, %v705_v44 }
 0x4b1   :  { %v711_v47 = vpack.c.bf16 %v1875_v45, %v1875_v45 }
 0x4b3   :  { %v713_v48 = vshrl.u32 %v711_v47, 16 }
 0x4b5   :  { %v715_v42 = vrot.slane %v713_v48, 1 }
 0x4b7   :  { %750 = vmatmul.mubr.bf16.vlgmr.msra.gmra.mrb[16].mxu0 %v715_v42  ;;  %1366 = vmatmul.mubr.bf16.vlgmr.msra.gmra.mrb[16].mxu1 %v715_v42 }
 0x4b8   :  { %837 = vmatpush1.bf16.msra.mxu0 %v1599_v23  ;;  %1370 = vmatpush3.bf16.msra.mxu1 %v1602_v25 }
 0x4b9   :  { %838 = vmatprep.subr.bf16.mxu0 %v1606_v28  ;;  %1371 = vmatprep.subr.bf16.mxu1 %v1553_v2 }
 0x4ba   :  { %868 = vmatprep.mubr.bf16.mxu0 %v1551_v0  ;;  %1385 = vmatprep.mubr.msk.bf16.mxu1 %vm1554_vm0, %v1553_v2 }
 0x4bc   :  { %839 = vmatpush1.bf16.msra.mxu0 %v1609_v31  ;;  %1372 = vmatpush3.bf16.msra.mxu1 %v1612_v34 }
 0x4bd   :  { %840 = vmatprep.subr.bf16.mxu0 %v1616_v37  ;;  %1373 = vmatprep.subr.bf16.mxu1 %v1553_v2 }
 0x4c0   :  { %841 = vmatpush1.bf16.msra.mxu0 %v1619_v41  ;;  %1374 = vmatpush3.bf16.msra.mxu1 %v1622_v43 }
 0x4c1   :  { %842 = vmatprep.subr.bf16.mxu0 %v1626_v46  ;;  %1375 = vmatprep.subr.bf16.mxu1 %v1553_v2 }
 0x4c4   :  { %843 = vmatpush1.bf16.msra.mxu0 %v1629_v50  ;;  %1376 = vmatpush3.bf16.msra.mxu1 %v1632_v52 }
 0x4c5   :  { %844 = vmatprep.subr.bf16.mxu0 %v1636_v55  ;;  %1377 = vmatprep.subr.bf16.mxu1 %v1553_v2 }
 0x4c8   :  { %845 = vmatpush1.bf16.msra.mxu0 %v1639_v59  ;;  %1378 = vmatpush3.bf16.msra.mxu1 %v1642_v63 }
 0x4c9   :  { %846 = vmatprep.subr.bf16.mxu0 %v1644_v1  ;;  %1379 = vmatprep.subr.bf16.mxu1 %v1553_v2 }
 0x4cc   :  { %847 = vmatpush1.bf16.msra.mxu0 %v1647_v6  ;;  %1380 = vmatpush3.bf16.msra.mxu1 %v1651_v10 }
 0x4cd   :  { %848 = vmatprep.subr.bf16.mxu0 %v1653_v11  ;;  %1381 = vmatprep.subr.bf16.mxu1 %v1553_v2 }
 0x4d0   :  { %849 = vmatpush1.bf16.msra.mxu0 %v1657_v20  ;;  %1382 = vmatpush3.bf16.msra.mxu1 %v1661_v21 }
 0x4d1   :  { %850 = vmatprep.subr.bf16.mxu0 %v1663_v22  ;;  %1383 = vmatprep.subr.bf16.mxu1 %v1553_v2 }
 0x4d4   :  { %851 = vmatpush1.bf16.msra.mxu0 %v1667_v30  ;;  %1384 = vmatpush3.bf16.msra.mxu1 %v1671_v32 }
 0x4d5   :  { %957 = vmatprep.subr.bf16.mxu0 %v1597_v19  ;;  %1389 = vmatprep.subr.bf16.mxu1 %v1553_v2 }
 0x58a   :  { %v751_v27 = vpop.f32.mrb[16].mxu0  ;;  %v792_v51 = vpop.f32.mrb[16].mxu1 }
 0x58b   :  { %v800_v39 = vrot.slane %v751_v27, 4  ;;  %v753_v53 = vpop.f32.mrb[17].mxu0  ;;  %v1367_v54 = vpop.f32.mrb[17].mxu1  ;;  %v818_v36 = vadd.f32 %v792_v51, %v1735_v35 }
 0x58c   :  { %v801_v56 = vrot.slane %v753_v53, 4  ;;  %v755_v57 = vpop.f32.mrb[18].mxu0  ;;  %v795_v7 = vpop.f32.mrb[18].mxu1 }
 0x58d   :  { %v804_v8 = vadd.f32 %v800_v39, %v1691_v58  ;;  %v756_v49 = vpop.f32.mrb[19].mxu0  ;;  %v1368_v12 = vpop.f32.mrb[19].mxu1  ;;  %v820_v38 = vrot.slane %v818_v36, 4  ;;  %v828_v58 = vrot.slane %v1875_v45, 7 }
 0x58e   :  { %v805_v13 = vadd.f32 %v801_v56, %v1716_v9 }
 0x58f   :  { %v1208_v24 = vmul.f32 -1.442695, %v804_v8 }
 0x590   :  { %v1209_v26 = vmul.f32 -1.442695, %v805_v13 }
 0x591   :  { %1484 = vpow2.f32 %v1208_v24 }
 0x592   :  { %1486 = vpow2.f32 %v1209_v26 }
 0x59b   :  { %v1485_v29 = vpop.eup %1484 }
 0x59c   :  { %v1487_v33 = vpop.eup %1486  ;;  %v812_v62 = vadd.f32 1.0, %v1485_v29 }
 0x59d   :  { %v813_v14 = vadd.f32 1.0, %v1487_v33 }
 0x59e   :  { %1488 = vrcp.f32 %v812_v62 }
 0x59f   :  { %1490 = vrcp.f32 %v813_v14 }
 0x5a8   :  { %v1489_v44 = vpop.eup %1488 }
 0x5a9   :  { %v1491_v47 = vpop.eup %1490  ;;  %v822_v48 = vmul.f32 %v1489_v44, %v820_v38 }
 0x5aa   :  { %v830_v42 = vmul.f32 %v1491_v47, %v828_v58  ;;  %v825_v27 = vsub.f32 1.0, %v1491_v47 }
 0x5ab   :  { %v823_v9 = vadd.f32 %v822_v48, %v1740_v40 }
 0x5ad   :  { %1492 = vtanh.f32 %v823_v9 }
 0x5b7   :  { %v1493_v39 = vpop.eup %1492 }
 0x5b8   :  { %v826_v53 = vmul.f32 %v1493_v39, %v825_v27 }
 0x5ba   :  { %v1919_v54 = vadd.f32 %v830_v42, %v826_v53 }
 0x5bc   :  { %v832_v56 = vpack.c.bf16 %v1919_v54, %v1919_v54 }
 0x5be   :  { %v834_v57 = vrot.slane %v832_v56, 2 }
 0x5c0   :  { %869 = vmatmul.mubr.bf16.vlgmr.msra.gmra.mrb[20].mxu0 %v834_v57  ;;  %1386 = vmatmul.mubr.bf16.vlgmr.msra.gmra.mrb[20].mxu1 %v834_v57 }
 0x5c1   :  { %958 = vmatpush1.bf16.msra.mxu0 %v1599_v23  ;;  %1390 = vmatpush3.bf16.msra.mxu1 %v1602_v25 }
 0x5c2   :  { %959 = vmatprep.subr.bf16.mxu0 %v1606_v28  ;;  %1391 = vmatprep.subr.bf16.mxu1 %v1553_v2 }
 0x5c3   :  { %989 = vmatprep.mubr.bf16.mxu0 %v1551_v0  ;;  %1405 = vmatprep.mubr.msk.bf16.mxu1 %vm1554_vm0, %v1553_v2 }
 0x5c5   :  { %960 = vmatpush1.bf16.msra.mxu0 %v1609_v31  ;;  %1392 = vmatpush3.bf16.msra.mxu1 %v1612_v34 }
 0x5c6   :  { %961 = vmatprep.subr.bf16.mxu0 %v1616_v37  ;;  %1393 = vmatprep.subr.bf16.mxu1 %v1553_v2 }
 0x5c9   :  { %962 = vmatpush1.bf16.msra.mxu0 %v1619_v41  ;;  %1394 = vmatpush3.bf16.msra.mxu1 %v1622_v43 }
 0x5ca   :  { %963 = vmatprep.subr.bf16.mxu0 %v1626_v46  ;;  %1395 = vmatprep.subr.bf16.mxu1 %v1553_v2 }
 0x5cd   :  { %964 = vmatpush1.bf16.msra.mxu0 %v1629_v50  ;;  %1396 = vmatpush3.bf16.msra.mxu1 %v1632_v52 }
 0x5ce   :  { %965 = vmatprep.subr.bf16.mxu0 %v1636_v55  ;;  %1397 = vmatprep.subr.bf16.mxu1 %v1553_v2 }
 0x5d1   :  { %966 = vmatpush1.bf16.msra.mxu0 %v1639_v59  ;;  %1398 = vmatpush3.bf16.msra.mxu1 %v1642_v63 }
 0x5d2   :  { %967 = vmatprep.subr.bf16.mxu0 %v1644_v1  ;;  %1399 = vmatprep.subr.bf16.mxu1 %v1553_v2 }
 0x5d5   :  { %968 = vmatpush1.bf16.msra.mxu0 %v1647_v6  ;;  %1400 = vmatpush3.bf16.msra.mxu1 %v1651_v10 }
 0x5d6   :  { %969 = vmatprep.subr.bf16.mxu0 %v1653_v11  ;;  %1401 = vmatprep.subr.bf16.mxu1 %v1553_v2 }
 0x5d9   :  { %970 = vmatpush1.bf16.msra.mxu0 %v1657_v20  ;;  %1402 = vmatpush3.bf16.msra.mxu1 %v1661_v21 }
 0x5da   :  { %971 = vmatprep.subr.bf16.mxu0 %v1663_v22  ;;  %1403 = vmatprep.subr.bf16.mxu1 %v1553_v2 }
 0x5dd   :  { %972 = vmatpush1.bf16.msra.mxu0 %v1667_v30  ;;  %1404 = vmatpush3.bf16.msra.mxu1 %v1671_v32 }
 0x5de   :  { %1076 = vmatprep.subr.bf16.mxu0 %v1597_v19  ;;  %1409 = vmatprep.subr.bf16.mxu1 %v1553_v2 }
 0x693   :  { %v870_v40 = vpop.f32.mrb[20].mxu0  ;;  %v911_v45 = vpop.f32.mrb[20].mxu1 }
 0x694   :  { %v919_v51 = vrot.slane %v870_v40, 3  ;;  %v872_v7 = vpop.f32.mrb[21].mxu0  ;;  %v1387_v8 = vpop.f32.mrb[21].mxu1  ;;  %v937_v58 = vadd.f32 %v911_v45, %v1735_v35 }
 0x695   :  { %v920_v49 = vrot.slane %v872_v7, 3  ;;  %v874_v12 = vpop.f32.mrb[22].mxu0  ;;  %v914_v13 = vpop.f32.mrb[22].mxu1 }
 0x696   :  { %v923_v24 = vadd.f32 %v919_v51, %v1695_v60  ;;  %v875_v26 = vpop.f32.mrb[23].mxu0  ;;  %v1388_v29 = vpop.f32.mrb[23].mxu1  ;;  %v939_v47 = vrot.slane %v937_v58, 3  ;;  %v947_v60 = vrot.slane %v1919_v54, 7 }
 0x697   :  { %v924_v33 = vadd.f32 %v920_v49, %v1704_v3 }
 0x698   :  { %v1210_v62 = vmul.f32 -1.442695, %v923_v24 }
 0x699   :  { %v1211_v14 = vmul.f32 -1.442695, %v924_v33 }
 0x69a   :  { %1494 = vpow2.f32 %v1210_v62 }
 0x69b   :  { %1496 = vpow2.f32 %v1211_v14 }
 0x6a4   :  { %v1495_v19 = vpop.eup %1494 }
 0x6a5   :  { %v1497_v36 = vpop.eup %1496  ;;  %v931_v38 = vadd.f32 1.0, %v1495_v19 }
 0x6a6   :  { %v932_v44 = vadd.f32 1.0, %v1497_v36 }
 0x6a7   :  { %1498 = vrcp.f32 %v931_v38 }
 0x6a8   :  { %1500 = vrcp.f32 %v932_v44 }
 0x6b1   :  { %v1499_v48 = vpop.eup %1498 }
 0x6b2   :  { %v1501_v42 = vpop.eup %1500  ;;  %v941_v9 = vmul.f32 %v1499_v48, %v939_v47 }
 0x6b3   :  { %v949_v27 = vmul.f32 %v1501_v42, %v947_v60  ;;  %v944_v39 = vsub.f32 1.0, %v1501_v42 }
 0x6b4   :  { %v942_v3 = vadd.f32 %v941_v9, %v1699_v61 }
 0x6b6   :  { %1502 = vtanh.f32 %v942_v3 }
 0x6c0   :  { %v1503_v53 = vpop.eup %1502 }
 0x6c1   :  { %v945_v56 = vmul.f32 %v1503_v53, %v944_v39 }
 0x6c3   :  { %v1963_v57 = vadd.f32 %v949_v27, %v945_v56 }
 0x6c5   :  { %v951_v40 = vpack.c.bf16 %v1963_v57, %v1963_v57 }
 0x6c7   :  { %v953_v51 = vshrl.u32 %v951_v40, 16 }
 0x6c9   :  { %v955_v45 = vrot.slane %v953_v51, 2 }
 0x6cb   :  { %990 = vmatmul.mubr.bf16.vlgmr.msra.gmra.mrb[24].mxu0 %v955_v45  ;;  %1406 = vmatmul.mubr.bf16.vlgmr.msra.gmra.mrb[24].mxu1 %v955_v45 }
 0x6cc   :  { %1077 = vmatpush1.bf16.msra.mxu0 %v1599_v23  ;;  %1410 = vmatpush3.bf16.msra.mxu1 %v1602_v25 }
 0x6cd   :  { %1078 = vmatprep.subr.bf16.mxu0 %v1606_v28  ;;  %1411 = vmatprep.subr.bf16.mxu1 %v1553_v2 }
 0x6ce   :  { %1108 = vmatprep.mubr.bf16.mxu0 %v1551_v0  ;;  %1425 = vmatprep.mubr.msk.bf16.mxu1 %vm1554_vm0, %v1553_v2 }
 0x6d0   :  { %1079 = vmatpush1.bf16.msra.mxu0 %v1609_v31  ;;  %1412 = vmatpush3.bf16.msra.mxu1 %v1612_v34 }
 0x6d1   :  { %1080 = vmatprep.subr.bf16.mxu0 %v1616_v37  ;;  %1413 = vmatprep.subr.bf16.mxu1 %v1553_v2 }
 0x6d4   :  { %1081 = vmatpush1.bf16.msra.mxu0 %v1619_v41  ;;  %1414 = vmatpush3.bf16.msra.mxu1 %v1622_v43 }
 0x6d5   :  { %1082 = vmatprep.subr.bf16.mxu0 %v1626_v46  ;;  %1415 = vmatprep.subr.bf16.mxu1 %v1553_v2 }
 0x6d8   :  { %1083 = vmatpush1.bf16.msra.mxu0 %v1629_v50  ;;  %1416 = vmatpush3.bf16.msra.mxu1 %v1632_v52 }
 0x6d9   :  { %1084 = vmatprep.subr.bf16.mxu0 %v1636_v55  ;;  %1417 = vmatprep.subr.bf16.mxu1 %v1553_v2 }
 0x6dc   :  { %1085 = vmatpush1.bf16.msra.mxu0 %v1639_v59  ;;  %1418 = vmatpush3.bf16.msra.mxu1 %v1642_v63 }
 0x6dd   :  { %1086 = vmatprep.subr.bf16.mxu0 %v1644_v1  ;;  %1419 = vmatprep.subr.bf16.mxu1 %v1553_v2 }
 0x6e0   :  { %1087 = vmatpush1.bf16.msra.mxu0 %v1647_v6  ;;  %1420 = vmatpush3.bf16.msra.mxu1 %v1651_v10 }
 0x6e1   :  { %1088 = vmatprep.subr.bf16.mxu0 %v1653_v11  ;;  %1421 = vmatprep.subr.bf16.mxu1 %v1553_v2 }
 0x6e4   :  { %1089 = vmatpush1.bf16.msra.mxu0 %v1657_v20  ;;  %1422 = vmatpush3.bf16.msra.mxu1 %v1661_v21  ;;  %v1068_v21 = vrot.slane %v1963_v57, 7 }
 0x6e5   :  { %1090 = vmatprep.subr.bf16.mxu0 %v1663_v22  ;;  %1423 = vmatprep.subr.bf16.mxu1 %v1553_v2 }
 0x6e8   :  { %1091 = vmatpush1.bf16.msra.mxu0 %v1667_v30  ;;  %1424 = vmatpush3.bf16.msra.mxu1 %v1671_v32 }
 0x79e   :  { %v991_v0 = vpop.f32.mrb[24].mxu0  ;;  %v1032_v23 = vpop.f32.mrb[24].mxu1 }
 0x79f   :  { %v1040_v25 = vrot.slane %v991_v0, 2  ;;  %v993_v28 = vpop.f32.mrb[25].mxu0  ;;  %v1407_v31 = vpop.f32.mrb[25].mxu1  ;;  %v1058_v10 = vadd.f32 %v1032_v23, %v1735_v35 }
 0x7a0   :  { %v1041_v34 = vrot.slane %v993_v28, 2  ;;  %v995_v37 = vpop.f32.mrb[26].mxu0  ;;  %v1035_v41 = vpop.f32.mrb[26].mxu1 }
 0x7a1   :  { %v1044_v43 = vadd.f32 %v1040_v25, %v1708_v4  ;;  %v996_v46 = vpop.f32.mrb[27].mxu0  ;;  %v1408_v50 = vpop.f32.mrb[27].mxu1  ;;  %v1060_v11 = vrot.slane %v1058_v10, 2 }
 0x7a2   :  { %v1045_v52 = vadd.f32 %v1041_v34, %v1720_v15 }
 0x7a3   :  { %v1212_v55 = vmul.f32 -1.442695, %v1044_v43 }
 0x7a4   :  { %v1213_v2 = vmul.f32 -1.442695, %v1045_v52 }
 0x7a5   :  { %1504 = vpow2.f32 %v1212_v55 }
 0x7a6   :  { %1506 = vpow2.f32 %v1213_v2 }
 0x7af   :  { %v1505_v59 = vpop.eup %1504 }
 0x7b0   :  { %v1507_v63 = vpop.eup %1506  ;;  %v1052_v1 = vadd.f32 1.0, %v1505_v59 }
 0x7b1   :  { %v1053_v6 = vadd.f32 1.0, %v1507_v63 }
 0x7b2   :  { %1508 = vrcp.f32 %v1052_v1 }
 0x7b3   :  { %1510 = vrcp.f32 %v1053_v6 }
 0x7bc   :  { %v1509_v20 = vpop.eup %1508 }
 0x7bd   :  { %v1511_v22 = vpop.eup %1510  ;;  %v1062_v30 = vmul.f32 %v1509_v20, %v1060_v11 }
 0x7be   :  { %v1070_v32 = vmul.f32 %v1511_v22, %v1068_v21  ;;  %v1065_v4 = vsub.f32 1.0, %v1511_v22 }
 0x7bf   :  { %v1063_v61 = vadd.f32 %v1062_v30, %v1712_v5 }
 0x7c1   :  { %1512 = vtanh.f32 %v1063_v61 }
 0x7cb   :  { %v1513_v15 = vpop.eup %1512 }
 0x7cc   :  { %v1066_v54 = vmul.f32 %v1513_v15, %v1065_v4 }
 0x7ce   :  { %v1071_v7 = vadd.f32 %v1070_v32, %v1066_v54 }
 0x7d0   :  { %v1072_v8 = vpack.c.bf16 %v1071_v7, %v1071_v7  ;;  %v1187_v39 = vrot.slane %v1071_v7, 7 }
 0x7d2   :  { %v1074_v49 = vrot.slane %v1072_v8, 3 }
 0x7d4   :  { %1109 = vmatmul.mubr.bf16.vlgmr.msra.gmra.mrb[28].mxu0 %v1074_v49  ;;  %1426 = vmatmul.mubr.bf16.vlgmr.msra.gmra.mrb[28].mxu1 %v1074_v49 }
 0x8a7   :  { %v1110_v12 = vpop.f32.mrb[28].mxu0  ;;  %v1151_v13 = vpop.f32.mrb[28].mxu1 }
 0x8a8   :  { %v1159_v24 = vrot.slane %v1110_v12, 1  ;;  %v1112_v26 = vpop.f32.mrb[29].mxu0  ;;  %v1427_v29 = vpop.f32.mrb[29].mxu1  ;;  %v1177_v9 = vadd.f32 %v1151_v13, %v1735_v35 }
 0x8a9   :  { %v1160_v33 = vrot.slane %v1112_v26, 1  ;;  %v1114_v62 = vpop.f32.mrb[30].mxu0  ;;  %v1154_v14 = vpop.f32.mrb[30].mxu1 }
 0x8aa   :  { %v1163_v19 = vadd.f32 %v1159_v24, %v1724_v16  ;;  %v1115_v5 = vpop.f32.mrb[31].mxu0  ;;  %v1428_v36 = vpop.f32.mrb[31].mxu1  ;;  %v1179_v27 = vrot.slane %v1177_v9, 1 }
 0x8ab   :  { %v1164_v38 = vadd.f32 %v1160_v33, %v1732_v18 }
 0x8ac   :  { %v1214_v44 = vmul.f32 -1.442695, %v1163_v19 }
 0x8ad   :  { %v1215_v58 = vmul.f32 -1.442695, %v1164_v38 }
 0x8ae   :  { %1514 = vpow2.f32 %v1214_v44 }
 0x8af   :  { %1516 = vpow2.f32 %v1215_v58 }
 0x8b8   :  { %v1515_v47 = vpop.eup %1514 }
 0x8b9   :  { %v1517_v48 = vpop.eup %1516  ;;  %v1171_v60 = vadd.f32 1.0, %v1515_v47 }
 0x8ba   :  { %v1172_v42 = vadd.f32 1.0, %v1517_v48 }
 0x8bb   :  { %1518 = vrcp.f32 %v1171_v60 }
 0x8bc   :  { %1520 = vrcp.f32 %v1172_v42 }
 0x8c5   :  { %v1519_v3 = vpop.eup %1518 }
 0x8c6   :  { %v1521_v16 = vpop.eup %1520  ;;  %v1181_v53 = vmul.f32 %v1519_v3, %v1179_v27 }
 0x8c7   :  { %v1189_v56 = vmul.f32 %v1521_v16, %v1187_v39  ;;  %v1184_v57 = vsub.f32 1.0, %v1521_v16 }
 0x8c8   :  { %v1182_v18 = vadd.f32 %v1181_v53, %v1728_v17 }
 0x8ca   :  { %1522 = vtanh.f32 %v1182_v18 }
 0x8d4   :  { %v1523_v40 = vpop.eup %1522 }
 0x8d5   :  { %v1185_v51 = vmul.f32 %v1523_v40, %v1184_v57 }
 0x8d7   :  { %v1190_v45 = vadd.f32 %v1189_v56, %v1185_v51 }
 0x8d9   :  { %1191 = vst [vmem:[%s2014_s2 - $0x7] sm:$0x80] %v1190_v45 }
 0x8da   :  { %1196 = vsyncpa [#allocation3], 1 }

</bundles_post_ra>
